<compile_context>
chip_gen: v5e
topology: v5e:2x2
jax: 0.10.0
libtpu: 0.0.40
codegen_flags: <defaults>
</compile_context>

<pallas_src>
import functools

import jax
import jax.numpy as jnp
import numpy as np
from jax.experimental import pallas as pl
from jax.experimental.pallas import tpu as pltpu


def _pick_tile(n, candidates=(512, 256, 128, 64, 32, 16, 8)):
    """Largest candidate that divides n (so blocks tile exactly), else full n."""
    for t in candidates:
        if n % t == 0:
            return t
    return n


# ---------------------------------------------------------------------------
# Tiled linear: y = x @ W + b. Rows tiled & pipelined, W/b VMEM-resident.
# ---------------------------------------------------------------------------
def _linear_kernel(x_ref, w_ref, b_ref, o_ref):
    acc = jnp.dot(x_ref[...], w_ref[...], preferred_element_type=jnp.float32)
    acc = acc + b_ref[...]
    o_ref[...] = acc.astype(o_ref.dtype)


def linear_pallas(x2d, w, b):
    """x2d: [R, K]; w: [K, N]; b: [N] -> [R, N]."""
    R, K = x2d.shape
    N = w.shape[1]
    tile_r = _pick_tile(R)
    grid = (pl.cdiv(R, tile_r),)
    b2d = b.reshape(1, N)
    itemsize = jnp.dtype(x2d.dtype).itemsize
    cost = pl.CostEstimate(
        flops=2 * R * K * N,
        transcendentals=0,
        bytes_accessed=(R * K + K * N + N + R * N) * itemsize,
    )
    return pl.pallas_call(
        _linear_kernel,
        out_shape=jax.ShapeDtypeStruct((R, N), x2d.dtype),
        grid_spec=pltpu.PrefetchScalarGridSpec(
            num_scalar_prefetch=0,
            grid=grid,
            in_specs=[
                pl.BlockSpec((tile_r, K), lambda i: (i, 0)),
                pl.BlockSpec((K, N), lambda i: (0, 0)),   # weights stay resident
                pl.BlockSpec((1, N), lambda i: (0, 0)),
            ],
            out_specs=pl.BlockSpec((tile_r, N), lambda i: (i, 0)),
        ),
        compiler_params=pltpu.CompilerParams(
            dimension_semantics=("parallel",)),
        cost_estimate=cost,
    )(x2d, w, b2d)


# ---------------------------------------------------------------------------
# Flash-style multi-head attention core (online softmax).
# q, k, v: [BH, N, dh]  ->  o: [BH, N, dh]
# ---------------------------------------------------------------------------
def _flash_attn_kernel(q_ref, k_ref, v_ref, o_ref, m_sc, l_sc, acc_sc, *, scale):
    ki = pl.program_id(2)

    @pl.when(ki == 0)
    def _():
        m_sc[...] = jnp.full(m_sc.shape, -jnp.inf, m_sc.dtype)
        l_sc[...] = jnp.zeros(l_sc.shape, l_sc.dtype)
        acc_sc[...] = jnp.zeros(acc_sc.shape, acc_sc.dtype)

    q = q_ref[...]                                       # (1, tq, dh)
    k = k_ref[...]                                       # (1, tk, dh)
    v = v_ref[...]                                       # (1, tk, dh)

    s = jnp.einsum("bqd,bkd->bqk", q, k,
                   preferred_element_type=jnp.float32) * scale
    m_prev = m_sc[...]
    m_new = jnp.maximum(m_prev, s.max(axis=-1, keepdims=True))
    alpha = jnp.exp(m_prev - m_new)
    p = jnp.exp(s - m_new)
    l_sc[...] = alpha * l_sc[...] + p.sum(axis=-1, keepdims=True)
    acc_sc[...] = alpha * acc_sc[...] + jnp.einsum(
        "bqk,bkd->bqd", p.astype(v.dtype), v,
        preferred_element_type=jnp.float32)
    m_sc[...] = m_new

    @pl.when(ki == pl.num_programs(2) - 1)
    def _():
        # Exact division keeps parity with the torch softmax reference.
        o_ref[...] = (acc_sc[...] / l_sc[...]).astype(o_ref.dtype)


def _flash_attention(q, k, v, scale):
    BH, N, dh = q.shape
    tile = _pick_tile(N)
    grid = (BH, pl.cdiv(N, tile), pl.cdiv(N, tile))
    kernel = functools.partial(_flash_attn_kernel, scale=scale)
    itemsize = jnp.dtype(q.dtype).itemsize
    cost = pl.CostEstimate(
        flops=4 * BH * N * N * dh,           # two matmuls
        transcendentals=BH * N * N,          # exp in softmax
        bytes_accessed=4 * BH * N * dh * itemsize,
    )
    return pl.pallas_call(
        kernel,
        out_shape=jax.ShapeDtypeStruct((BH, N, dh), q.dtype),
        grid_spec=pltpu.PrefetchScalarGridSpec(
            num_scalar_prefetch=0,
            grid=grid,
            in_specs=[
                pl.BlockSpec((1, tile, dh), lambda b, qi, ki: (b, qi, 0)),
                pl.BlockSpec((1, tile, dh), lambda b, qi, ki: (b, ki, 0)),
                pl.BlockSpec((1, tile, dh), lambda b, qi, ki: (b, ki, 0)),
            ],
            out_specs=pl.BlockSpec((1, tile, dh), lambda b, qi, ki: (b, qi, 0)),
            scratch_shapes=[
                pltpu.VMEM((1, tile, 1), jnp.float32),    # running max
                pltpu.VMEM((1, tile, 1), jnp.float32),    # running sum
                pltpu.VMEM((1, tile, dh), jnp.float32),   # output accumulator
            ],
        ),
        compiler_params=pltpu.CompilerParams(
            dimension_semantics=("parallel", "parallel", "arbitrary")),
        cost_estimate=cost,
    )(q, k, v)


# ---------------------------------------------------------------------------
# Full Attention forward (mirrors the PyTorch module).
# ---------------------------------------------------------------------------
def attention_pallas(x, w_qkv=None, b_qkv=None, w_proj=None, b_proj=None, *,
                     num_heads, qk_scale=None, with_qkv=True):
    """x: [B, N, C]. Weights are [in, out] (transposed vs. torch nn.Linear)."""
    B, N, C = x.shape
    head_dim = C // num_heads
    scale = qk_scale if qk_scale is not None else head_dim ** (-0.5)
    rows = B * N

    if with_qkv:
        if b_qkv is None:                                 # qkv_bias=False
            b_qkv = jnp.zeros((3 * C,), x.dtype)
        qkv2d = linear_pallas(x.reshape(rows, C), w_qkv, b_qkv)      # [R, 3C]
        qkv = qkv2d.reshape(B, N, 3, num_heads, head_dim)
        qkv = jnp.transpose(qkv, (2, 0, 3, 1, 4))                    # [3,B,H,N,dh]
        q, k, v = qkv[0], qkv[1], qkv[2]
    else:
        q = jnp.transpose(x.reshape(B, N, num_heads, head_dim), (0, 2, 1, 3))
        k = v = q

    bh = B * num_heads
    o = _flash_attention(q.reshape(bh, N, head_dim),
                         k.reshape(bh, N, head_dim),
                         v.reshape(bh, N, head_dim), scale)          # [BH,N,dh]
    o = o.reshape(B, num_heads, N, head_dim)
    o = jnp.transpose(o, (0, 2, 1, 3)).reshape(rows, C)              # merge heads

    if with_qkv:
        o = linear_pallas(o, w_proj, b_proj)                         # output proj
    # attn_drop / proj_drop with p=0.0 are identity -> skipped.
    return o.reshape(B, N, C)


# ---------------------------------------------------------------------------
# Pure-JAX reference for the self-check.
# ---------------------------------------------------------------------------
def _attention_ref(x, w_qkv, b_qkv, w_proj, b_proj, num_heads, scale,
                   with_qkv=True):
    B, N, C = x.shape
    dh = C // num_heads
    if with_qkv:
        qkv = (x.reshape(B * N, C) @ w_qkv + b_qkv).reshape(B, N, 3, num_heads, dh)
        qkv = jnp.transpose(qkv, (2, 0, 3, 1, 4))
        q, k, v = qkv[0], qkv[1], qkv[2]
    else:
        q = jnp.transpose(x.reshape(B, N, num_heads, dh), (0, 2, 1, 3))
        k = v = q
    attn = jax.nn.softmax(
        jnp.einsum("bhqd,bhkd->bhqk", q, k) * scale, axis=-1)
    o = jnp.einsum("bhqk,bhkd->bhqd", attn, v)
    o = jnp.transpose(o, (0, 2, 1, 3)).reshape(B * N, C)
    if with_qkv:
        o = o @ w_proj + b_proj
    return o.reshape(B, N, C)


if __name__ == "__main__":
    # Small shapes consistent with the module's forward: x = [B, N, C].
    B, N, C = 2, 8, 32
    num_heads = 8
    head_dim = C // num_heads
    scale = head_dim ** (-0.5)

    key = jax.random.PRNGKey(0)
    kx, kq, kp, kb = jax.random.split(key, 4)

    x = jax.random.normal(kx, (B, N, C), jnp.float32)
    w_qkv = 0.05 * jax.random.normal(kq, (C, 3 * C), jnp.float32)    # [C, 3C]
    b_qkv = None                                                     # qkv_bias=False
    w_proj = 0.05 * jax.random.normal(kp, (C, C), jnp.float32)       # [C, C]
    b_proj = 0.01 * jax.random.normal(kb, (C,), jnp.float32)

    # with_qkv=True path (default configuration of the module)
    out = attention_pallas(x, w_qkv, b_qkv, w_proj, b_proj, num_heads=num_heads)
    jax.block_until_ready(out)
    ref = _attention_ref(x, w_qkv, jnp.zeros((3 * C,), jnp.float32),
                         w_proj, b_proj, num_heads, scale, with_qkv=True)
    assert out.shape == (B, N, C)
    np.testing.assert_allclose(np.asarray(out), np.asarray(ref),
                               rtol=2e-5, atol=2e-5)

    # with_qkv=False path (q = k = v = reshaped x, no projections)
    out_nq = attention_pallas(x, num_heads=num_heads, with_qkv=False)
    jax.block_until_ready(out_nq)
    ref_nq = _attention_ref(x, None, None, None, None, num_heads, scale,
                            with_qkv=False)
    np.testing.assert_allclose(np.asarray(out_nq), np.asarray(ref_nq),
                               rtol=2e-5, atol=2e-5)

    print("KERNEL_OK")
</pallas_src>

<mosaic_0001>
module attributes {stable_mosaic.version = 11 : i64} {
  func.func @_linear_kernel(%arg0: i32, %arg1: memref<16x32xf32, #tpu.memory_space<vmem>>, %arg2: memref<32x96xf32, #tpu.memory_space<vmem>>, %arg3: memref<1x96xf32, #tpu.memory_space<vmem>>, %arg4: memref<16x96xf32, #tpu.memory_space<vmem>>) attributes {dimension_semantics = [#tpu.dimension_semantics<parallel>], iteration_bounds = array<i64: 1>, scalar_prefetch = 0 : i64, scratch_operands = 0 : i64, tpu.core_type = #tpu.core_type<tc>, window_params = [{transform_indices = @transform_0, window_bounds = array<i64: 16, 32>}, {pipeline_mode = #tpu.pipeline_mode<synchronous>, transform_indices = @transform_1, window_bounds = array<i64: 32, 96>}, {pipeline_mode = #tpu.pipeline_mode<synchronous>, transform_indices = @transform_2, window_bounds = array<i64: 1, 96>}, {transform_indices = @transform_3, window_bounds = array<i64: 16, 96>}]} {
    %c0 = arith.constant 0 : index
    %c0_0 = arith.constant 0 : index
    %0 = vector.load %arg1[%c0, %c0_0] : memref<16x32xf32, #tpu.memory_space<vmem>>, vector<16x32xf32>
    %c0_1 = arith.constant 0 : index
    %c0_2 = arith.constant 0 : index
    %1 = vector.load %arg2[%c0_1, %c0_2] : memref<32x96xf32, #tpu.memory_space<vmem>>, vector<32x96xf32>
    %cst = arith.constant dense<0.000000e+00> : vector<16x96xf32>
    %2 = tpu.matmul %0, %1, %cst {dimension_numbers = #tpu.dot_dimension_numbers<[1], [0], [0], [1], [0, 0, 1, 1], [], []>} : vector<16x32xf32>, vector<32x96xf32>, vector<16x96xf32> -> vector<16x96xf32>
    %c0_3 = arith.constant 0 : index
    %c0_4 = arith.constant 0 : index
    %3 = vector.load %arg3[%c0_3, %c0_4] : memref<1x96xf32, #tpu.memory_space<vmem>>, vector<1x96xf32>
    %4 = vector.broadcast %3 : vector<1x96xf32> to vector<16x96xf32>
    %5 = arith.addf %2, %4 : vector<16x96xf32>
    %c0_5 = arith.constant 0 : index
    %c0_6 = arith.constant 0 : index
    %6 = vector.load %arg4[%c0_5, %c0_6] : memref<16x96xf32, #tpu.memory_space<vmem>>, vector<16x96xf32>
    tpu.vector_store %arg4[%c0_5, %c0_6], %5 {strides = array<i32>} : memref<16x96xf32, #tpu.memory_space<vmem>>, vector<16x96xf32>,
    return
  }
  func.func @transform_0(%arg0: i32) -> (i32, i32) {
    %c0_i32 = arith.constant 0 : i32
    %c0_i32_0 = arith.constant 0 : i32
    return %arg0, %c0_i32 : i32, i32
  }
  func.func @transform_1(%arg0: i32) -> (i32, i32) {
    %c0_i32 = arith.constant 0 : i32
    %c0_i32_0 = arith.constant 0 : i32
    %c0_i32_1 = arith.constant 0 : i32
    return %c0_i32, %c0_i32_0 : i32, i32
  }
  func.func @transform_2(%arg0: i32) -> (i32, i32) {
    %c0_i32 = arith.constant 0 : i32
    %c0_i32_0 = arith.constant 0 : i32
    %c0_i32_1 = arith.constant 0 : i32
    return %c0_i32, %c0_i32_0 : i32, i32
  }
  func.func @transform_3(%arg0: i32) -> (i32, i32) {
    %c0_i32 = arith.constant 0 : i32
    %c0_i32_0 = arith.constant 0 : i32
    return %arg0, %c0_i32 : i32, i32
  }
}

</mosaic_0001>

<bundles_post_ra>
// kernel: tpu_custom_call.1
= control target key start
LH: loop header
LB: loop body
LE: loop exit
PB: predicated region body
PF: predicated region fallthrough
CT: control target
= control target key end

     0   :  { %8 = vsyncpa [#allocation3], 0  ;;  %s246_s0 = inlined_call_operand.hbm [shape: f32[16,32], index: 0, kind: input, shape index: {}]   ;;  %s247_s1 = inlined_call_operand.hbm [shape: f32[32,96], index: 1, kind: input, shape index: {}]   ;;  %s248_s2 = inlined_call_operand.vmem [shape: f32[1,96], index: 2, kind: input, shape index: {}]   ;;  %s249_s3 = inlined_call_operand.hbm [shape: f32[16,96], index: 3, kind: output, shape index: {}]  }
   0x1   :  { %9 = vsyncpa [#allocation6], 0 }
   0x2   :  { %10 = vsyncpa [#allocation4], 0  ;;  %s15_s14 = sshll.u32 %s246_s0, 4  ;;  %s200_s15 = smov [#allocation2]   ;;  %s16_s14 = int_to_ptr.hbm [resolvable:$true] %s15_s14 }
   0x3   :  { %s17_s16 = sshll.u32 %s200_s15, 4  ;;  %s28_s19 = sshll.u32 %s247_s1, 4  ;;  %s18_s16 = int_to_ptr.vmem [resolvable:$true] %s17_s16  ;;  %s29_s19 = int_to_ptr.hbm [resolvable:$true] %s28_s19 }
   0x4   :  { %s201_s20 = smov 128   ;;  %s202_s21 = smov 8  }
   0x5   :  { %23 = dma.hbm_to_vmem [thread:$0]  %s16_s14, 256, %s18_s16, [#allocation3], %s201_s20, %s201_s20, %s202_s21  }
   0x6   :  { %s203_s22 = smov [#allocation5]  }
   0x7   :  { %s30_s23 = sshll.u32 %s203_s22, 4  ;;  %s31_s23 = int_to_ptr.vmem [resolvable:$true] %s30_s23 }
   0x8   :  { %36 = dma.hbm_to_vmem [thread:$0]  %s29_s19, 512, %s31_s23, [#allocation6], %s201_s20, %s201_s20, %s202_s21  }
   0x9   :  { %194 = dma.done.wait [#allocation3], 256  }
   0xa   :  { %195 = vsyncadd [#allocation3], 4294967040 }
   0xb   :  { %196 = dma.done.wait [#allocation6], 512  }
   0xc   :  { %197 = vsyncadd [#allocation6], 4294966784  ;;  %v52_v0 = vld [vmem:[#allocation5 + $0x18] sm:$0xff]  ;;  %v51_v1 = vld [vmem:[#allocation5 + $0x10] sm:$0xff]  ;;  %vm57_vm0 = vcmask 261120   ;;  %s204_s24 = smov [#allocation7]  }
   0xd   :  { %76 = vmatpush.msra.mxu0 %v52_v0  ;;  %112 = vmatpush.msra.mxu1 %v52_v0  ;;  %v50_v2 = vld [vmem:[#allocation5 + $0x8] sm:$0xff]  ;;  %v49_v3 = vld [vmem:[#allocation5] sm:$0xff]  ;;  %v47_v4 = vld [vmem:[#allocation2] sm:$0xff]  ;;  %s94_s25 = sshll.u32 %s204_s24, 4  ;;  %s96_s28 = sshll.u32 %s249_s3, 4  ;;  %vm87_vm1 = vcmask 785408   ;;  %s95_s25 = int_to_ptr.vmem [resolvable:$true] %s94_s25  ;;  %s97_s28 = int_to_ptr.hbm [resolvable:$true] %s96_s28 }
   0xe   :  { %v48_v5 = vld [vmem:[#allocation2 + $0x8] sm:$0xff]  ;;  %v121_v6 = vld [vmem:[%s248_s2] ss:$0 sm:$0xff] }
   0xf   :  { %77 = vmatpush.msra.mxu0 %v51_v1  ;;  %113 = vmatpush.msra.mxu1 %v51_v1 }
  0x11   :  { %78 = vmatpush.msra.mxu0 %v50_v2  ;;  %114 = vmatpush.msra.mxu1 %v50_v2 }
  0x13   :  { %79 = vmatpush.msra.mxu0 %v49_v3  ;;  %115 = vmatpush.msra.mxu1 %v49_v3 }
  0x14   :  { %110 = vmatmul.msk.f32.vlgmr.msra.gmra.mxu0 %vm57_vm0, %v47_v4  ;;  %111 = vmatmul.msk.f32.vlgmr.msra.gmra.mxu1 %vm57_vm0, %v48_v5 }
  0x91   :  { %v81_v7 = vpop.f32.mrf.mxu0  ;;  %v84_v8 = vpop.f32.mrf.mxu1 }
  0x92   :  { %v82_v9 = vadd.f32 %v121_v6, %v81_v7  ;;  %v85_v10 = vadd.f32 %v121_v6, %v84_v8 }
  0x94   :  { %88 = vst.msk [vmem:[#allocation7] sm:$0xff] %vm87_vm1, %v82_v9 }
  0x95   :  { %89 = vst.msk [vmem:[#allocation7 + $0x8] sm:$0xff] %vm87_vm1, %v85_v10 }
  0x96   :  { %102 = dma.vmem_to_hbm [thread:$0]  %s95_s25, 256, %s97_s28, [#allocation4], %s201_s20, %s201_s20, %s202_s21  }
  0x97   :  { %198 = dma.done.wait [#allocation4], 256  }
  0x98   :  { %199 = vsyncadd [#allocation4], 4294967040 }
  0x99   :  { %107 = vsyncpa [#allocation3], 1 }
  0x9a   :  { %108 = vsyncpa [#allocation6], 1 }
  0x9b   :  { %109 = vsyncpa [#allocation4], 1 }

</bundles_post_ra>
